<compile_context>
chip_gen: v7x
topology: tpu7x:2x2x1
jax: 0.10.0
libtpu: 0.0.40
codegen_flags: <defaults>
</compile_context>

<pallas_src>
import functools

import jax
import jax.numpy as jnp
from jax.experimental import pallas as pl
from jax.experimental.pallas import tpu as pltpu

LN_EPS = 1e-5  # nn.LayerNorm default


def _round_up(n, m):
    return ((n + m - 1) // m) * m


def _resnorm_kernel(x_ref, w1_ref, b1_ref, g1_ref, be1_ref,
                    w2_ref, b2_ref, g2_ref, be2_ref, o_ref,
                    *, h_valid, h_pad, compute_dtype):
    x_raw = x_ref[...]
    x_f32 = x_raw.astype(jnp.float32)

    # Lane mask for LayerNorm statistics when the hidden dim was padded to 128*k.
    if h_valid != h_pad:
        lane = jax.lax.broadcasted_iota(jnp.int32, (1, h_pad), 1)
        mask = (lane < h_valid).astype(jnp.float32)
    else:
        mask = None
    inv_n = 1.0 / float(h_valid)

    def layernorm(y, gamma, beta):
        # PyTorch LayerNorm: biased variance over the (valid) last dim, eps=1e-5.
        if mask is None:
            mean = jnp.mean(y, axis=-1, keepdims=True)
            centered = y - mean
            var = jnp.mean(centered * centered, axis=-1, keepdims=True)
        else:
            mean = jnp.sum(y * mask, axis=-1, keepdims=True) * inv_n
            centered = (y - mean) * mask          # zero out padded lanes
            var = jnp.sum(centered * centered, axis=-1, keepdims=True) * inv_n
        inv = jax.lax.rsqrt(var + LN_EPS)
        return centered * inv * gamma + beta

    # ---- Linear 1 (MXU, low-precision operands, f32 accumulate) + ReLU + LN1 ----
    y = jnp.dot(x_raw.astype(compute_dtype), w1_ref[...],
                preferred_element_type=jnp.float32) + b1_ref[...]
    y = jnp.maximum(y, 0.0)
    y = layernorm(y, g1_ref[...], be1_ref[...])

    # ---- Linear 2 + ReLU + LN2 ----
    y = jnp.dot(y.astype(compute_dtype), w2_ref[...],
                preferred_element_type=jnp.float32) + b2_ref[...]
    y = jnp.maximum(y, 0.0)
    y = layernorm(y, g2_ref[...], be2_ref[...])

    # ---- Residual (f32) ----
    o_ref[...] = (x_f32 + y).astype(o_ref.dtype)


@functools.partial(jax.jit, static_argnames=("row_tile", "compute_dtype"))
def resnorm_layer(x, params, row_tile=256, compute_dtype=jnp.bfloat16):
    """x: [..., H]. params: dict of w1t,b1,g1,beta1,w2t,b2,g2,beta2 (all f32)."""
    orig_shape = x.shape
    H = orig_shape[-1]
    x2d = x.reshape(-1, H).astype(jnp.float32)
    R = x2d.shape[0]

    # Lane-align the hidden dim (multiple of 128); pick an effective row tile that is
    # a multiple of 8 and no larger than needed; pad rows to a multiple of it.
    Hp = _round_up(H, 128)
    rt = min(row_tile, _round_up(R, 8))
    rt = max(8, (rt // 8) * 8)
    Rp = _round_up(R, rt)

    if Hp != H:
        x2d = jnp.pad(x2d, ((0, 0), (0, Hp - H)))
    if Rp != R:
        x2d = jnp.pad(x2d, ((0, Rp - R), (0, 0)))

    def pad_w(w):
        # Cast once here (not per grid step) and zero-pad extra rows/cols.
        w = w.astype(compute_dtype)
        if Hp != H:
            w = jnp.pad(w, ((0, Hp - H), (0, Hp - H)))
        return w

    def pad_v(v):
        v = v.astype(jnp.float32)
        if Hp != H:
            v = jnp.pad(v, (0, Hp - H))            # zeros: padded lanes stay 0
        return v.reshape(1, Hp)

    w1 = pad_w(params["w1t"])
    w2 = pad_w(params["w2t"])
    b1, g1, be1 = pad_v(params["b1"]), pad_v(params["g1"]), pad_v(params["beta1"])
    b2, g2, be2 = pad_v(params["b2"]), pad_v(params["g2"]), pad_v(params["beta2"])

    x_spec = pl.BlockSpec((rt, Hp), lambda i: (i, 0))
    # Constant index_map: the weight/vector blocks are fetched once and reused
    # across every row tile (no repeated DMA).
    w_spec = pl.BlockSpec((Hp, Hp), lambda i: (0, 0))
    v_spec = pl.BlockSpec((1, Hp), lambda i: (0, 0))

    w_bytes = jnp.dtype(compute_dtype).itemsize
    cost = pl.CostEstimate(
        flops=2 * 2 * Rp * Hp * Hp,                       # two H x H matmuls
        transcendentals=2 * Rp,                           # one rsqrt per row per LN
        bytes_accessed=2 * Rp * Hp * 4 + 2 * Hp * Hp * w_bytes + 6 * Hp * 4,
    )

    kernel = functools.partial(_resnorm_kernel, h_valid=H, h_pad=Hp,
                               compute_dtype=compute_dtype)

    out = pl.pallas_call(
        kernel,
        out_shape=jax.ShapeDtypeStruct((Rp, Hp), x.dtype),
        grid_spec=pltpu.PrefetchScalarGridSpec(
            num_scalar_prefetch=0,
            grid=(Rp // rt,),
            in_specs=[x_spec,
                      w_spec, v_spec, v_spec, v_spec,
                      w_spec, v_spec, v_spec, v_spec],
            out_specs=x_spec,
        ),
        compiler_params=pltpu.CompilerParams(
            dimension_semantics=("parallel",),
            vmem_limit_bytes=64 * 1024 * 1024,
        ),
        cost_estimate=cost,
    )(x2d, w1, b1, g1, be1, w2, b2, g2, be2)

    out = out[:R, :H]
    return out.reshape(orig_shape)


def init_params(key, l_size):
    """Deterministic synthetic parameter init (matches PyTorch shapes)."""
    k1, k2, k3, k4 = jax.random.split(key, 4)
    bound = 1.0 / jnp.sqrt(l_size)
    # nn.Linear weights are (out, in); store transposed (in, out) for x @ W.
    w1 = jax.random.uniform(k1, (l_size, l_size), jnp.float32, -bound, bound)
    b1 = jax.random.uniform(k2, (l_size,), jnp.float32, -bound, bound)
    w2 = jax.random.uniform(k3, (l_size, l_size), jnp.float32, -bound, bound)
    b2 = jax.random.uniform(k4, (l_size,), jnp.float32, -bound, bound)
    return {
        "w1t": w1.T, "b1": b1,
        "g1": jnp.ones((l_size,), jnp.float32), "beta1": jnp.zeros((l_size,), jnp.float32),
        "w2t": w2.T, "b2": b2,
        "g2": jnp.ones((l_size,), jnp.float32), "beta2": jnp.zeros((l_size,), jnp.float32),
    }


def resnorm_reference(x, params):
    """Pure-JAX f32 reference for correctness checking."""
    y = x @ params["w1t"] + params["b1"]
    y = jnp.maximum(y, 0.0)
    mean = jnp.mean(y, -1, keepdims=True)
    var = jnp.mean((y - mean) ** 2, -1, keepdims=True)
    y = (y - mean) * jax.lax.rsqrt(var + LN_EPS) * params["g1"] + params["beta1"]
    y = y @ params["w2t"] + params["b2"]
    y = jnp.maximum(y, 0.0)
    mean = jnp.mean(y, -1, keepdims=True)
    var = jnp.mean((y - mean) ** 2, -1, keepdims=True)
    y = (y - mean) * jax.lax.rsqrt(var + LN_EPS) * params["g2"] + params["beta2"]
    return x + y


if __name__ == "__main__":
    key = jax.random.PRNGKey(0)
    kx, kp = jax.random.split(key)

    batch, seq, hidden = 2, 8, 32
    x = jax.random.normal(kx, (batch, seq, hidden), jnp.float32)
    params = init_params(kp, hidden)

    ref = resnorm_reference(x, params)

    # f32-matmul path: tight check against the pure-JAX reference.
    out_f32 = jax.block_until_ready(
        resnorm_layer(x, params, row_tile=256, compute_dtype=jnp.float32))
    assert out_f32.shape == x.shape
    assert jnp.allclose(out_f32, ref, atol=1e-4, rtol=1e-4), "f32 path mismatch"

    # Default bf16-MXU path (f32 accumulation, f32 LayerNorm): looser tolerance.
    out_bf16 = jax.block_until_ready(resnorm_layer(x, params))
    assert out_bf16.shape == x.shape
    assert jnp.allclose(out_bf16, ref, atol=5e-2, rtol=5e-2), "bf16 path mismatch"

    print("KERNEL_OK")
</pallas_src>

<mosaic_0001>
module attributes {stable_mosaic.version = 11 : i64} {
  func.func @_resnorm_kernel(%arg0: i32, %arg1: memref<16x128xf32, #tpu.memory_space<vmem>>, %arg2: memref<128x128xf32, #tpu.memory_space<vmem>>, %arg3: memref<1x128xf32, #tpu.memory_space<vmem>>, %arg4: memref<1x128xf32, #tpu.memory_space<vmem>>, %arg5: memref<1x128xf32, #tpu.memory_space<vmem>>, %arg6: memref<128x128xf32, #tpu.memory_space<vmem>>, %arg7: memref<1x128xf32, #tpu.memory_space<vmem>>, %arg8: memref<1x128xf32, #tpu.memory_space<vmem>>, %arg9: memref<1x128xf32, #tpu.memory_space<vmem>>, %arg10: memref<16x128xf32, #tpu.memory_space<vmem>>) attributes {dimension_semantics = [#tpu.dimension_semantics<parallel>], iteration_bounds = array<i64: 1>, scalar_prefetch = 0 : i64, scratch_operands = 0 : i64, tpu.core_type = #tpu.core_type<tc>, window_params = [{transform_indices = @transform_0, window_bounds = array<i64: 16, 128>}, {pipeline_mode = #tpu.pipeline_mode<synchronous>, transform_indices = @transform_1, window_bounds = array<i64: 128, 128>}, {pipeline_mode = #tpu.pipeline_mode<synchronous>, transform_indices = @transform_2, window_bounds = array<i64: 1, 128>}, {pipeline_mode = #tpu.pipeline_mode<synchronous>, transform_indices = @transform_3, window_bounds = array<i64: 1, 128>}, {pipeline_mode = #tpu.pipeline_mode<synchronous>, transform_indices = @transform_4, window_bounds = array<i64: 1, 128>}, {pipeline_mode = #tpu.pipeline_mode<synchronous>, transform_indices = @transform_5, window_bounds = array<i64: 128, 128>}, {pipeline_mode = #tpu.pipeline_mode<synchronous>, transform_indices = @transform_6, window_bounds = array<i64: 1, 128>}, {pipeline_mode = #tpu.pipeline_mode<synchronous>, transform_indices = @transform_7, window_bounds = array<i64: 1, 128>}, {pipeline_mode = #tpu.pipeline_mode<synchronous>, transform_indices = @transform_8, window_bounds = array<i64: 1, 128>}, {transform_indices = @transform_9, window_bounds = array<i64: 16, 128>}]} {
    %c0 = arith.constant 0 : index
    %c0_0 = arith.constant 0 : index
    %0 = vector.load %arg1[%c0, %c0_0] : memref<16x128xf32, #tpu.memory_space<vmem>>, vector<16x128xf32>
    %1 = tpu.iota {dimensions = array<i32: 1>} : vector<1x128xi32>
    %c32_i32 = arith.constant 32 : i32
    %2 = vector.broadcast %c32_i32 : i32 to vector<1x128xi32>
    %3 = arith.cmpi slt, %1, %2 : vector<1x128xi32>
    %4 = arith.extui %3 : vector<1x128xi1> to vector<1x128xi32>
    %5 = arith.sitofp %4 : vector<1x128xi32> to vector<1x128xf32>
    %c0_1 = arith.constant 0 : index
    %c0_2 = arith.constant 0 : index
    %6 = vector.load %arg2[%c0_1, %c0_2] : memref<128x128xf32, #tpu.memory_space<vmem>>, vector<128x128xf32>
    %cst = arith.constant dense<0.000000e+00> : vector<16x128xf32>
    %7 = tpu.matmul %0, %6, %cst {dimension_numbers = #tpu.dot_dimension_numbers<[1], [0], [0], [1], [0, 0, 1, 1], [], []>} : vector<16x128xf32>, vector<128x128xf32>, vector<16x128xf32> -> vector<16x128xf32>
    %c0_3 = arith.constant 0 : index
    %c0_4 = arith.constant 0 : index
    %8 = vector.load %arg3[%c0_3, %c0_4] : memref<1x128xf32, #tpu.memory_space<vmem>>, vector<1x128xf32>
    %9 = vector.broadcast %8 : vector<1x128xf32> to vector<16x128xf32>
    %10 = arith.addf %7, %9 : vector<16x128xf32>
    %cst_5 = arith.constant 0.000000e+00 : f32
    %11 = vector.broadcast %cst_5 : f32 to vector<16x128xf32>
    %12 = arith.maximumf %10, %11 : vector<16x128xf32>
    %c0_6 = arith.constant 0 : index
    %c0_7 = arith.constant 0 : index
    %13 = vector.load %arg4[%c0_6, %c0_7] : memref<1x128xf32, #tpu.memory_space<vmem>>, vector<1x128xf32>
    %c0_8 = arith.constant 0 : index
    %c0_9 = arith.constant 0 : index
    %14 = vector.load %arg5[%c0_8, %c0_9] : memref<1x128xf32, #tpu.memory_space<vmem>>, vector<1x128xf32>
    %15 = vector.broadcast %5 : vector<1x128xf32> to vector<16x128xf32>
    %16 = arith.mulf %12, %15 : vector<16x128xf32>
    %cst_10 = arith.constant dense<0.000000e+00> : vector<16xf32>
    %17 = vector.multi_reduction <add>, %16, %cst_10 [1] : vector<16x128xf32> to vector<16xf32>
    %18 = vector.shape_cast %17 : vector<16xf32> to vector<16x1xf32>
    %cst_11 = arith.constant 3.125000e-02 : f32
    %19 = vector.broadcast %cst_11 : f32 to vector<16x1xf32>
    %20 = arith.mulf %18, %19 : vector<16x1xf32>
    %21 = vector.broadcast %20 : vector<16x1xf32> to vector<16x128xf32>
    %22 = arith.subf %12, %21 : vector<16x128xf32>
    %23 = vector.broadcast %5 : vector<1x128xf32> to vector<16x128xf32>
    %24 = arith.mulf %22, %23 : vector<16x128xf32>
    %25 = arith.mulf %24, %24 : vector<16x128xf32>
    %cst_12 = arith.constant dense<0.000000e+00> : vector<16xf32>
    %26 = vector.multi_reduction <add>, %25, %cst_12 [1] : vector<16x128xf32> to vector<16xf32>
    %27 = vector.shape_cast %26 : vector<16xf32> to vector<16x1xf32>
    %cst_13 = arith.constant 3.125000e-02 : f32
    %28 = vector.broadcast %cst_13 : f32 to vector<16x1xf32>
    %29 = arith.mulf %27, %28 : vector<16x1xf32>
    %cst_14 = arith.constant 9.99999974E-6 : f32
    %30 = vector.broadcast %cst_14 : f32 to vector<16x1xf32>
    %31 = arith.addf %29, %30 : vector<16x1xf32>
    %32 = math.rsqrt %31 : vector<16x1xf32>
    %33 = vector.broadcast %32 : vector<16x1xf32> to vector<16x128xf32>
    %34 = arith.mulf %24, %33 : vector<16x128xf32>
    %35 = vector.broadcast %13 : vector<1x128xf32> to vector<16x128xf32>
    %36 = arith.mulf %34, %35 : vector<16x128xf32>
    %37 = vector.broadcast %14 : vector<1x128xf32> to vector<16x128xf32>
    %38 = arith.addf %36, %37 : vector<16x128xf32>
    %c0_15 = arith.constant 0 : index
    %c0_16 = arith.constant 0 : index
    %39 = vector.load %arg6[%c0_15, %c0_16] : memref<128x128xf32, #tpu.memory_space<vmem>>, vector<128x128xf32>
    %cst_17 = arith.constant dense<0.000000e+00> : vector<16x128xf32>
    %40 = tpu.matmul %38, %39, %cst_17 {dimension_numbers = #tpu.dot_dimension_numbers<[1], [0], [0], [1], [0, 0, 1, 1], [], []>} : vector<16x128xf32>, vector<128x128xf32>, vector<16x128xf32> -> vector<16x128xf32>
    %c0_18 = arith.constant 0 : index
    %c0_19 = arith.constant 0 : index
    %41 = vector.load %arg7[%c0_18, %c0_19] : memref<1x128xf32, #tpu.memory_space<vmem>>, vector<1x128xf32>
    %42 = vector.broadcast %41 : vector<1x128xf32> to vector<16x128xf32>
    %43 = arith.addf %40, %42 : vector<16x128xf32>
    %cst_20 = arith.constant 0.000000e+00 : f32
    %44 = vector.broadcast %cst_20 : f32 to vector<16x128xf32>
    %45 = arith.maximumf %43, %44 : vector<16x128xf32>
    %c0_21 = arith.constant 0 : index
    %c0_22 = arith.constant 0 : index
    %46 = vector.load %arg8[%c0_21, %c0_22] : memref<1x128xf32, #tpu.memory_space<vmem>>, vector<1x128xf32>
    %c0_23 = arith.constant 0 : index
    %c0_24 = arith.constant 0 : index
    %47 = vector.load %arg9[%c0_23, %c0_24] : memref<1x128xf32, #tpu.memory_space<vmem>>, vector<1x128xf32>
    %48 = vector.broadcast %5 : vector<1x128xf32> to vector<16x128xf32>
    %49 = arith.mulf %45, %48 : vector<16x128xf32>
    %cst_25 = arith.constant dense<0.000000e+00> : vector<16xf32>
    %50 = vector.multi_reduction <add>, %49, %cst_25 [1] : vector<16x128xf32> to vector<16xf32>
    %51 = vector.shape_cast %50 : vector<16xf32> to vector<16x1xf32>
    %cst_26 = arith.constant 3.125000e-02 : f32
    %52 = vector.broadcast %cst_26 : f32 to vector<16x1xf32>
    %53 = arith.mulf %51, %52 : vector<16x1xf32>
    %54 = vector.broadcast %53 : vector<16x1xf32> to vector<16x128xf32>
    %55 = arith.subf %45, %54 : vector<16x128xf32>
    %56 = vector.broadcast %5 : vector<1x128xf32> to vector<16x128xf32>
    %57 = arith.mulf %55, %56 : vector<16x128xf32>
    %58 = arith.mulf %57, %57 : vector<16x128xf32>
    %cst_27 = arith.constant dense<0.000000e+00> : vector<16xf32>
    %59 = vector.multi_reduction <add>, %58, %cst_27 [1] : vector<16x128xf32> to vector<16xf32>
    %60 = vector.shape_cast %59 : vector<16xf32> to vector<16x1xf32>
    %cst_28 = arith.constant 3.125000e-02 : f32
    %61 = vector.broadcast %cst_28 : f32 to vector<16x1xf32>
    %62 = arith.mulf %60, %61 : vector<16x1xf32>
    %cst_29 = arith.constant 9.99999974E-6 : f32
    %63 = vector.broadcast %cst_29 : f32 to vector<16x1xf32>
    %64 = arith.addf %62, %63 : vector<16x1xf32>
    %65 = math.rsqrt %64 : vector<16x1xf32>
    %66 = vector.broadcast %65 : vector<16x1xf32> to vector<16x128xf32>
    %67 = arith.mulf %57, %66 : vector<16x128xf32>
    %68 = vector.broadcast %46 : vector<1x128xf32> to vector<16x128xf32>
    %69 = arith.mulf %67, %68 : vector<16x128xf32>
    %70 = vector.broadcast %47 : vector<1x128xf32> to vector<16x128xf32>
    %71 = arith.addf %69, %70 : vector<16x128xf32>
    %72 = arith.addf %0, %71 : vector<16x128xf32>
    %c0_30 = arith.constant 0 : index
    %c0_31 = arith.constant 0 : index
    %73 = vector.load %arg10[%c0_30, %c0_31] : memref<16x128xf32, #tpu.memory_space<vmem>>, vector<16x128xf32>
    tpu.vector_store %arg10[%c0_30, %c0_31], %72 {strides = array<i32>} : memref<16x128xf32, #tpu.memory_space<vmem>>, vector<16x128xf32>,
    return
  }
  func.func @transform_0(%arg0: i32) -> (i32, i32) {
    %c0_i32 = arith.constant 0 : i32
    %c0_i32_0 = arith.constant 0 : i32
    return %arg0, %c0_i32 : i32, i32
  }
  func.func @transform_1(%arg0: i32) -> (i32, i32) {
    %c0_i32 = arith.constant 0 : i32
    %c0_i32_0 = arith.constant 0 : i32
    %c0_i32_1 = arith.constant 0 : i32
    return %c0_i32, %c0_i32_0 : i32, i32
  }
  func.func @transform_2(%arg0: i32) -> (i32, i32) {
    %c0_i32 = arith.constant 0 : i32
    %c0_i32_0 = arith.constant 0 : i32
    %c0_i32_1 = arith.constant 0 : i32
    return %c0_i32, %c0_i32_0 : i32, i32
  }
  func.func @transform_3(%arg0: i32) -> (i32, i32) {
    %c0_i32 = arith.constant 0 : i32
    %c0_i32_0 = arith.constant 0 : i32
    %c0_i32_1 = arith.constant 0 : i32
    return %c0_i32, %c0_i32_0 : i32, i32
  }
  func.func @transform_4(%arg0: i32) -> (i32, i32) {
    %c0_i32 = arith.constant 0 : i32
    %c0_i32_0 = arith.constant 0 : i32
    %c0_i32_1 = arith.constant 0 : i32
    return %c0_i32, %c0_i32_0 : i32, i32
  }
  func.func @transform_5(%arg0: i32) -> (i32, i32) {
    %c0_i32 = arith.constant 0 : i32
    %c0_i32_0 = arith.constant 0 : i32
    %c0_i32_1 = arith.constant 0 : i32
    return %c0_i32, %c0_i32_0 : i32, i32
  }
  func.func @transform_6(%arg0: i32) -> (i32, i32) {
    %c0_i32 = arith.constant 0 : i32
    %c0_i32_0 = arith.constant 0 : i32
    %c0_i32_1 = arith.constant 0 : i32
    return %c0_i32, %c0_i32_0 : i32, i32
  }
  func.func @transform_7(%arg0: i32) -> (i32, i32) {
    %c0_i32 = arith.constant 0 : i32
    %c0_i32_0 = arith.constant 0 : i32
    %c0_i32_1 = arith.constant 0 : i32
    return %c0_i32, %c0_i32_0 : i32, i32
  }
  func.func @transform_8(%arg0: i32) -> (i32, i32) {
    %c0_i32 = arith.constant 0 : i32
    %c0_i32_0 = arith.constant 0 : i32
    %c0_i32_1 = arith.constant 0 : i32
    return %c0_i32, %c0_i32_0 : i32, i32
  }
  func.func @transform_9(%arg0: i32) -> (i32, i32) {
    %c0_i32 = arith.constant 0 : i32
    %c0_i32_0 = arith.constant 0 : i32
    return %arg0, %c0_i32 : i32, i32
  }
}

</mosaic_0001>

<bundles_post_ra>
// kernel: resnorm_layer.1
= control target key start
LH: loop header
LB: loop body
LE: loop exit
PB: predicated region body
PF: predicated region fallthrough
CT: control target
= control target key end

     0   :  { %14 = vsyncpa [#allocation3], 0  ;;  %s1114_s0 = inlined_call_operand.hbm [shape: f32[16,128], index: 0, kind: input, shape index: {}]   ;;  %s1115_s1 = inlined_call_operand.hbm [shape: f32[128,128], index: 1, kind: input, shape index: {}]   ;;  %s1116_s2 = inlined_call_operand.hbm [shape: f32[1,128], index: 2, kind: input, shape index: {}]   ;;  %s1117_s3 = inlined_call_operand.hbm [shape: f32[1,128], index: 3, kind: input, shape index: {}]   ;;  %s1118_s4 = inlined_call_operand.hbm [shape: f32[1,128], index: 4, kind: input, shape index: {}]   ;;  %s1119_s5 = inlined_call_operand.hbm [shape: f32[128,128], index: 5, kind: input, shape index: {}]   ;;  %s1120_s6 = inlined_call_operand.hbm [shape: f32[1,128], index: 6, kind: input, shape index: {}]   ;;  %s1121_s7 = inlined_call_operand.hbm [shape: f32[1,128], index: 7, kind: input, shape index: {}]   ;;  %s1122_s8 = inlined_call_operand.hbm [shape: f32[1,128], index: 8, kind: input, shape index: {}]   ;;  %s1123_s9 = inlined_call_operand.hbm [shape: f32[16,128], index: 9, kind: output, shape index: {}]  }
   0x1   :  { %15 = vsyncpa [#allocation6], 0 }
   0x2   :  { %16 = vsyncpa [#allocation9], 0 }
   0x3   :  { %17 = vsyncpa [#allocation12], 0 }
   0x4   :  { %18 = vsyncpa [#allocation15], 0 }
   0x5   :  { %19 = vsyncpa [#allocation4], 0  ;;  %s893_s30 = smov [#allocation5]   ;;  %s894_s11 = smov [#allocation8]  }
   0x6   :  { %s37_s10 = sshll.u32 %s893_s30, 4  ;;  %s60_s12 = sshll.u32 %s894_s11, 4  ;;  %s38_s10 = int_to_ptr.vmem [resolvable:$true] %s37_s10  ;;  %s956_s12 = int_to_ptr.vmem [resolvable:$true] %s60_s12 }
   0x7   :  { %s661_s15 = scalar_lea.hbm %s1115_s1, 2048 }
   0x8   :  { %p662_p0 = scmp.ne.s32.totalorder %s1115_s1, %s661_s15  ;;  %p665_p1 = scmp.lt.u32.totalorder %s661_s15, %s1115_s1 }
   0xa   :  { %p667_p2 = pnand %p665_p1, %p662_p0 }
   0xc   :  { %670 = shalt.err (!%p667_p2)
}
   0xd   :  { %s671_s20 = scalar_lea.vmem %s38_s10, 2048  ;;  %p676_p4 = scmp.lt.s32.totalorder %s38_s10, %s38_s10 }
   0xe   :  { %p672_p3 = scmp.ne.s32.totalorder %s38_s10, %s671_s20  ;;  %p677_p5 = scmp.lt.s32.totalorder %s671_s20, %s671_s20 }
  0x10   :  { %p678_p6 = por %p677_p5, %p676_p4 }
  0x12   :  { %p679_p7 = pnand %p678_p6, %p672_p3 }
  0x14   :  { %682 = shalt.err (!%p679_p7)
}
  0x15   :  { %s895_s21 = smov 128   ;;  %s896_s22 = smov 8  }
  0x16   :  { %43 = dma.hbm_to_vmem [thread:$0]  %s1115_s1, 2048, %s38_s10, [#allocation6], %s895_s21, %s895_s21, %s896_s22  }
  0x17   :  { %s683_s27 = scalar_lea.hbm %s1117_s3, 16 }
  0x18   :  { %p684_p8 = scmp.ne.s32.totalorder %s1117_s3, %s683_s27  ;;  %p687_p9 = scmp.lt.u32.totalorder %s683_s27, %s1117_s3 }
  0x1a   :  { %p689_p10 = pnand %p687_p9, %p684_p8 }
  0x1c   :  { %692 = shalt.err (!%p689_p10)
}
  0x1d   :  { %s693_s13 = scalar_lea.vmem %s956_s12, 16  ;;  %s697_s1 = scalar_lea.vmem %s956_s12, 32 }
  0x1e   :  { %p694_p11 = scmp.ne.s32.totalorder %s956_s12, %s693_s13  ;;  %p698_p12 = scmp.lt.s32.totalorder %s956_s12, %s956_s12 }
  0x1f   :  { %p699_p13 = scmp.lt.s32.totalorder %s697_s1, %s693_s13 }
  0x21   :  { %p700_p0 = por %p699_p13, %p698_p12 }
  0x23   :  { %p701_p1 = pnand %p700_p0, %p694_p11 }
  0x25   :  { %704 = shalt.err (!%p701_p1)
}
  0x26   :  { %63 = dma.hbm_to_vmem [thread:$0]  %s1117_s3, 16, %s956_s12, [#allocation9]  }
  0x27   :  { %s897_s15 = smov [#allocation11]   ;;  %s898_s17 = smov [#allocation14]  }
  0x28   :  { %s79_s16 = sshll.u32 %s897_s15, 4  ;;  %s102_s18 = sshll.u32 %s898_s17, 4  ;;  %s80_s16 = int_to_ptr.vmem [resolvable:$true] %s79_s16  ;;  %s103_s18 = int_to_ptr.vmem [resolvable:$true] %s102_s18 }
  0x29   :  { %s705_s23 = scalar_lea.hbm %s1119_s5, 2048 }
  0x2a   :  { %p706_p2 = scmp.ne.s32.totalorder %s1119_s5, %s705_s23  ;;  %p709_p3 = scmp.lt.u32.totalorder %s705_s23, %s1119_s5 }
  0x2c   :  { %p711_p4 = pnand %p709_p3, %p706_p2 }
  0x2e   :  { %714 = shalt.err (!%p711_p4)
}
  0x2f   :  { %s715_s3 = scalar_lea.vmem %s80_s16, 2048  ;;  %p720_p6 = scmp.lt.s32.totalorder %s80_s16, %s80_s16 }
  0x30   :  { %p716_p5 = scmp.ne.s32.totalorder %s80_s16, %s715_s3  ;;  %p721_p7 = scmp.lt.s32.totalorder %s715_s3, %s715_s3 }
  0x32   :  { %p722_p8 = por %p721_p7, %p720_p6 }
  0x34   :  { %p723_p9 = pnand %p722_p8, %p716_p5 }
  0x36   :  { %726 = shalt.err (!%p723_p9)
}
  0x37   :  { %85 = dma.hbm_to_vmem [thread:$0]  %s1119_s5, 2048, %s80_s16, [#allocation12], %s895_s21, %s895_s21, %s896_s22  }
  0x38   :  { %s727_s11 = scalar_lea.hbm %s1121_s7, 16 }
  0x39   :  { %p728_p10 = scmp.ne.s32.totalorder %s1121_s7, %s727_s11  ;;  %p731_p11 = scmp.lt.u32.totalorder %s727_s11, %s1121_s7 }
  0x3b   :  { %p733_p12 = pnand %p731_p11, %p728_p10 }
  0x3d   :  { %736 = shalt.err (!%p733_p12)
}
  0x3e   :  { %s737_s15 = scalar_lea.vmem %s103_s18, 16  ;;  %s741_s17 = scalar_lea.vmem %s103_s18, 32 }
  0x3f   :  { %p738_p13 = scmp.ne.s32.totalorder %s103_s18, %s737_s15  ;;  %p742_p0 = scmp.lt.s32.totalorder %s103_s18, %s103_s18 }
  0x40   :  { %p743_p1 = scmp.lt.s32.totalorder %s741_s17, %s737_s15 }
  0x42   :  { %p744_p2 = por %p743_p1, %p742_p0 }
  0x44   :  { %p745_p3 = pnand %p744_p2, %p738_p13 }
  0x46   :  { %748 = shalt.err (!%p745_p3)
}
  0x47   :  { %105 = dma.hbm_to_vmem [thread:$0]  %s1121_s7, 16, %s103_s18, [#allocation15]  }
  0x48   :  { %s899_s19 = smov [#allocation2]   ;;  %s900_s23 = smov [#allocation7]  }
  0x49   :  { %s25_s20 = sshll.u32 %s899_s19, 4  ;;  %s50_s24 = sshll.u32 %s900_s23, 4  ;;  %s26_s20 = int_to_ptr.vmem [resolvable:$true] %s25_s20  ;;  %s51_s24 = int_to_ptr.vmem [resolvable:$true] %s50_s24 }
  0x4a   :  { %s749_s27 = scalar_lea.hbm %s1114_s0, 256 }
  0x4b   :  { %p750_p4 = scmp.ne.s32.totalorder %s1114_s0, %s749_s27  ;;  %p753_p5 = scmp.lt.u32.totalorder %s749_s27, %s1114_s0 }
  0x4d   :  { %p755_p6 = pnand %p753_p5, %p750_p4 }
  0x4f   :  { %758 = shalt.err (!%p755_p6)
}
  0x50   :  { %s759_s7 = scalar_lea.vmem %s26_s20, 256  ;;  %p764_p8 = scmp.lt.s32.totalorder %s26_s20, %s26_s20 }
  0x51   :  { %p760_p7 = scmp.ne.s32.totalorder %s26_s20, %s759_s7  ;;  %p765_p9 = scmp.lt.s32.totalorder %s759_s7, %s759_s7 }
  0x53   :  { %p766_p10 = por %p765_p9, %p764_p8 }
  0x55   :  { %p767_p11 = pnand %p766_p10, %p760_p7 }
  0x57   :  { %770 = shalt.err (!%p767_p11)
}
  0x58   :  { %31 = dma.hbm_to_vmem [thread:$0]  %s1114_s0, 256, %s26_s20, [#allocation3], %s895_s21, %s895_s21, %s896_s22  }
  0x59   :  { %s771_s1 = scalar_lea.hbm %s1116_s2, 16 }
  0x5a   :  { %p772_p12 = scmp.ne.s32.totalorder %s1116_s2, %s771_s1  ;;  %p775_p13 = scmp.lt.u32.totalorder %s771_s1, %s1116_s2 }
  0x5c   :  { %p777_p0 = pnand %p775_p13, %p772_p12 }
  0x5e   :  { %780 = shalt.err (!%p777_p0)
}
  0x5f   :  { %s781_s5 = scalar_lea.vmem %s51_s24, 16  ;;  %s785_s16 = scalar_lea.vmem %s51_s24, 32 }
  0x60   :  { %p782_p1 = scmp.ne.s32.totalorder %s51_s24, %s781_s5  ;;  %p786_p2 = scmp.lt.s32.totalorder %s51_s24, %s51_s24 }
  0x61   :  { %p787_p3 = scmp.lt.s32.totalorder %s785_s16, %s781_s5 }
  0x63   :  { %p788_p4 = por %p787_p3, %p786_p2 }
  0x65   :  { %p789_p5 = pnand %p788_p4, %p782_p1 }
  0x67   :  { %792 = shalt.err (!%p789_p5)
}
  0x68   :  { %53 = dma.hbm_to_vmem [thread:$0]  %s1116_s2, 16, %s51_s24, [#allocation6]  }
  0x69   :  { %s901_s20 = smov [#allocation10]   ;;  %s902_s25 = smov [#allocation13]  }
  0x6a   :  { %s70_s23 = sshll.u32 %s901_s20, 4  ;;  %s92_s26 = sshll.u32 %s902_s25, 4  ;;  %s71_s23 = int_to_ptr.vmem [resolvable:$true] %s70_s23  ;;  %s93_s26 = int_to_ptr.vmem [resolvable:$true] %s92_s26 }
  0x6b   :  { %s793_s12 = scalar_lea.hbm %s1118_s4, 16 }
  0x6c   :  { %p794_p6 = scmp.ne.s32.totalorder %s1118_s4, %s793_s12  ;;  %p797_p7 = scmp.lt.u32.totalorder %s793_s12, %s1118_s4 }
  0x6e   :  { %p799_p8 = pnand %p797_p7, %p794_p6 }
  0x70   :  { %802 = shalt.err (!%p799_p8)
}
  0x71   :  { %s803_s2 = scalar_lea.vmem %s71_s23, 16  ;;  %s807_s24 = scalar_lea.vmem %s71_s23, 32 }
  0x72   :  { %p804_p9 = scmp.ne.s32.totalorder %s71_s23, %s803_s2  ;;  %p808_p10 = scmp.lt.s32.totalorder %s71_s23, %s71_s23 }
  0x73   :  { %p809_p11 = scmp.lt.s32.totalorder %s807_s24, %s803_s2 }
  0x75   :  { %p810_p12 = por %p809_p11, %p808_p10 }
  0x77   :  { %p811_p13 = pnand %p810_p12, %p804_p9 }
  0x79   :  { %814 = shalt.err (!%p811_p13)
}
  0x7a   :  { %73 = dma.hbm_to_vmem [thread:$0]  %s1118_s4, 16, %s71_s23, [#allocation9]  }
  0x7b   :  { %s815_s10 = scalar_lea.hbm %s1120_s6, 16 }
  0x7c   :  { %p816_p0 = scmp.ne.s32.totalorder %s1120_s6, %s815_s10  ;;  %p819_p1 = scmp.lt.u32.totalorder %s815_s10, %s1120_s6 }
  0x7e   :  { %p821_p2 = pnand %p819_p1, %p816_p0 }
  0x80   :  { %824 = shalt.err (!%p821_p2)
}
  0x81   :  { %s825_s16 = scalar_lea.vmem %s93_s26, 16  ;;  %s829_s0 = scalar_lea.vmem %s93_s26, 32 }
  0x82   :  { %p826_p3 = scmp.ne.s32.totalorder %s93_s26, %s825_s16  ;;  %p830_p4 = scmp.lt.s32.totalorder %s93_s26, %s93_s26 }
  0x83   :  { %p831_p5 = scmp.lt.s32.totalorder %s829_s0, %s825_s16 }
  0x85   :  { %p832_p6 = por %p831_p5, %p830_p4 }
  0x87   :  { %p833_p7 = pnand %p832_p6, %p826_p3 }
  0x89   :  { %836 = shalt.err (!%p833_p7)
}
  0x8a   :  { %95 = dma.hbm_to_vmem [thread:$0]  %s1120_s6, 16, %s93_s26, [#allocation12]  }
  0x8b   :  { %s903_s20 = smov [#allocation16]   ;;  %s837_s3 = scalar_lea.hbm %s1122_s8, 16 }
  0x8c   :  { %s112_s23 = sshll.u32 %s903_s20, 4  ;;  %p838_p8 = scmp.ne.s32.totalorder %s1122_s8, %s837_s3  ;;  %s113_s23 = int_to_ptr.vmem [resolvable:$true] %s112_s23 }
  0x8d   :  { %p841_p9 = scmp.lt.u32.totalorder %s837_s3, %s1122_s8 }
  0x8f   :  { %p843_p10 = pnand %p841_p9, %p838_p8 }
  0x91   :  { %846 = shalt.err (!%p843_p10)
}
  0x92   :  { %s847_s18 = scalar_lea.vmem %s113_s23, 16  ;;  %s851_s6 = scalar_lea.vmem %s113_s23, 32 }
  0x93   :  { %p848_p11 = scmp.ne.s32.totalorder %s113_s23, %s847_s18  ;;  %p852_p12 = scmp.lt.s32.totalorder %s113_s23, %s113_s23 }
  0x94   :  { %p853_p13 = scmp.lt.s32.totalorder %s851_s6, %s847_s18 }
  0x96   :  { %p854_p0 = por %p853_p13, %p852_p12 }
  0x98   :  { %p855_p1 = pnand %p854_p0, %p848_p11 }
  0x9a   :  { %858 = shalt.err (!%p855_p1)
}
  0x9b   :  { %115 = dma.hbm_to_vmem [thread:$0]  %s1122_s8, 16, %s113_s23, [#allocation15]  }
  0x9c   :  { %881 = dma.done.wait [#allocation3], 256  }
  0x9d   :  { %882 = vsyncadd [#allocation3], 4294967040 }
  0x9e   :  { %883 = dma.done.wait [#allocation6], 2064  }
  0x9f   :  { %884 = vsyncadd [#allocation6], 4294965232 }
  0xa0   :  { %885 = dma.done.wait [#allocation9], 32  }
  0xa1   :  { %886 = vsyncadd [#allocation9], 4294967264 }
  0xa2   :  { %887 = dma.done.wait [#allocation12], 2064  }
  0xa3   :  { %888 = vsyncadd [#allocation12], 4294965232 }
  0xa4   :  { %889 = dma.done.wait [#allocation15], 32  }
  0xa5   :  { %890 = vsyncadd [#allocation15], 4294967264  ;;  %v150_v0 = vld [vmem:[#allocation5] sm:$0xff]  ;;  %v151_v1 = vld [vmem:[#allocation5 + $0x8] sm:$0xff]  ;;  %v145_v26 = vlaneseq  ;;  %v904_v33 = vmov 0.0   ;;  %s905_s8 = smov [#allocation17]  }
  0xa6   :  { %v152_v2 = vld [vmem:[#allocation5 + $0x10] sm:$0xff]  ;;  %v576_v3 = vpack.c.bf16 %v151_v1, %v150_v0  ;;  %v153_v4 = vld [vmem:[#allocation5 + $0x18] sm:$0xff]  ;;  %v154_v6 = vld [vmem:[#allocation5 + $0x20] sm:$0xff]  ;;  %s447_s24 = sshll.u32 %s905_s8, 4  ;;  %s448_s24 = int_to_ptr.vmem [resolvable:$true] %s447_s24 }
  0xa7   :  { %v580_v5 = vpack.c.bf16 %v153_v4, %v152_v2  ;;  %v155_v7 = vld [vmem:[#allocation5 + $0x28] sm:$0xff]  ;;  %v1081_v9 = vld [vmem:[#allocation2] sm:$0xff]  ;;  %v157_v11 = vld [vmem:[#allocation5 + $0x38] sm:$0xff]  ;;  %v146_v27 = vand.u32 127, %v145_v26  ;;  %s859_s30 = scalar_lea.vmem %s448_s24, 256  ;;  %p864_p3 = scmp.lt.s32.totalorder %s448_s24, %s448_s24 }
  0xa8   :  { %577 = vmatprep.subr.bf16.mxu0 %v576_v3  ;;  %v584_v8 = vpack.c.bf16 %v155_v7, %v154_v6  ;;  %v156_v10 = vld [vmem:[#allocation5 + $0x30] sm:$0xff]  ;;  %538 = vmatprep.mubr.f32.mxu0 %v1081_v9  ;;  %v158_v13 = vld [vmem:[#allocation5 + $0x40] sm:$0xff]  ;;  %v159_v14 = vld [vmem:[#allocation5 + $0x48] sm:$0xff]  ;;  %p860_p2 = scmp.ne.s32.totalorder %s448_s24, %s859_s30  ;;  %p865_p4 = scmp.lt.s32.totalorder %s859_s30, %s859_s30 }
  0xa9   :  { %579 = vmatpush3.bf16.msra.mxu0 %v576_v3  ;;  %v588_v12 = vpack.c.bf16 %v157_v11, %v156_v10  ;;  %v592_v15 = vpack.c.bf16 %v159_v14, %v158_v13  ;;  %v160_v16 = vld [vmem:[#allocation5 + $0x50] sm:$0xff]  ;;  %v161_v17 = vld [vmem:[#allocation5 + $0x58] sm:$0xff]  ;;  %v162_v19 = vld [vmem:[#allocation5 + $0x60] sm:$0xff]  ;;  %vm147_vm0 = vcmp.lt.s32.totalorder %v146_v27, 32 }
  0xaa   :  { %581 = vmatprep.subr.bf16.mxu0 %v580_v5  ;;  %v596_v18 = vpack.c.bf16 %v161_v17, %v160_v16  ;;  %v163_v20 = vld [vmem:[#allocation5 + $0x68] sm:$0xff]  ;;  %v164_v22 = vld [vmem:[#allocation5 + $0x70] sm:$0xff]  ;;  %v165_v23 = vld [vmem:[#allocation5 + $0x78] sm:$0xff]  ;;  %v1087_v34 = vsel %vm147_vm0, 1.0, %v904_v33  ;;  %p866_p5 = por %p865_p4, %p864_p3 }
  0xab   :  { %v600_v21 = vpack.c.bf16 %v163_v20, %v162_v19  ;;  %v604_v24 = vpack.c.bf16 %v165_v23, %v164_v22  ;;  %v1084_v25 = vld [vmem:[#allocation2 + $0x8] sm:$0xff]  ;;  %v464_v28 = vld [vmem:[#allocation7] ss:$0 sm:$0xff]  ;;  %v294_v39 = vld [vmem:[#allocation11] sm:$0xff] }
  0xac   :  { %v295_v40 = vld [vmem:[#allocation11 + $0x8] sm:$0xff]  ;;  %v296_v41 = vld [vmem:[#allocation11 + $0x10] sm:$0xff]  ;;  %v297_v43 = vld [vmem:[#allocation11 + $0x18] sm:$0xff]  ;;  %p867_p6 = pnand %p866_p5, %p860_p2 }
  0xad   :  { %583 = vmatpush3.bf16.msra.mxu0 %v580_v5  ;;  %v608_v42 = vpack.c.bf16 %v295_v40, %v294_v39  ;;  %v612_v44 = vpack.c.bf16 %v297_v43, %v296_v41  ;;  %v298_v55 = vld [vmem:[#allocation11 + $0x20] sm:$0xff]  ;;  %v299_v56 = vld [vmem:[#allocation11 + $0x28] sm:$0xff]  ;;  %v300_v58 = vld [vmem:[#allocation11 + $0x30] sm:$0xff] }
  0xae   :  { %585 = vmatprep.subr.bf16.mxu0 %v584_v8  ;;  %v616_v57 = vpack.c.bf16 %v299_v56, %v298_v55  ;;  %v301_v59 = vld [vmem:[#allocation11 + $0x38] sm:$0xff]  ;;  %v302_v61 = vld [vmem:[#allocation11 + $0x40] sm:$0xff]  ;;  %v303_v62 = vld [vmem:[#allocation11 + $0x48] sm:$0xff] }
  0xaf   :  { %609 = vmatprep.subr.bf16.mxu1 %v608_v42  ;;  %v620_v60 = vpack.c.bf16 %v301_v59, %v300_v58  ;;  %v624_v63 = vpack.c.bf16 %v303_v62, %v302_v61  ;;  %v304_v0 = vld [vmem:[#allocation11 + $0x50] sm:$0xff]  ;;  %v305_v1 = vld [vmem:[#allocation11 + $0x58] sm:$0xff]  ;;  %v306_v2 = vld [vmem:[#allocation11 + $0x60] sm:$0xff] }
  0xb0   :  { %611 = vmatpush3.bf16.msra.mxu1 %v608_v42  ;;  %v628_v3 = vpack.c.bf16 %v305_v1, %v304_v0  ;;  %v307_v4 = vld [vmem:[#allocation11 + $0x68] sm:$0xff]  ;;  %v308_v6 = vld [vmem:[#allocation11 + $0x70] sm:$0xff]  ;;  %v309_v7 = vld [vmem:[#allocation11 + $0x78] sm:$0xff] }
  0xb1   :  { %587 = vmatpush3.bf16.msra.mxu0 %v584_v8  ;;  %613 = vmatprep.subr.bf16.mxu1 %v612_v44  ;;  %v632_v5 = vpack.c.bf16 %v307_v4, %v306_v2  ;;  %v636_v8 = vpack.c.bf16 %v309_v7, %v308_v6  ;;  %v465_v17 = vld [vmem:[#allocation8] ss:$0 sm:$0xff]  ;;  %v466_v19 = vld [vmem:[#allocation10] ss:$0 sm:$0xff]  ;;  %v467_v27 = vld [vmem:[#allocation13] ss:$0 sm:$0xff] }
  0xb2   :  { %589 = vmatprep.subr.bf16.mxu0 %v588_v12 }
  0xb4   :  { %615 = vmatpush3.bf16.msra.mxu1 %v612_v44 }
  0xb5   :  { %591 = vmatpush3.bf16.msra.mxu0 %v588_v12  ;;  %617 = vmatprep.subr.bf16.mxu1 %v616_v57 }
  0xb6   :  { %593 = vmatprep.subr.bf16.mxu0 %v592_v15 }
  0xb8   :  { %619 = vmatpush3.bf16.msra.mxu1 %v616_v57  ;;  %v469_v57 = vld [vmem:[#allocation16] ss:$0 sm:$0xff] }
  0xb9   :  { %595 = vmatpush3.bf16.msra.mxu0 %v592_v15  ;;  %621 = vmatprep.subr.bf16.mxu1 %v620_v60 }
  0xba   :  { %597 = vmatprep.subr.bf16.mxu0 %v596_v18 }
  0xbc   :  { %623 = vmatpush3.bf16.msra.mxu1 %v620_v60 }
  0xbd   :  { %599 = vmatpush3.bf16.msra.mxu0 %v596_v18  ;;  %625 = vmatprep.subr.bf16.mxu1 %v624_v63 }
  0xbe   :  { %601 = vmatprep.subr.bf16.mxu0 %v600_v21 }
  0xc0   :  { %627 = vmatpush3.bf16.msra.mxu1 %v624_v63 }
  0xc1   :  { %603 = vmatpush3.bf16.msra.mxu0 %v600_v21  ;;  %629 = vmatprep.subr.bf16.mxu1 %v628_v3 }
  0xc2   :  { %605 = vmatprep.subr.bf16.mxu0 %v604_v24 }
  0xc4   :  { %631 = vmatpush3.bf16.msra.mxu1 %v628_v3 }
  0xc5   :  { %607 = vmatpush3.bf16.msra.mxu0 %v604_v24  ;;  %633 = vmatprep.subr.bf16.mxu1 %v632_v5 }
  0xc8   :  { %539 = vmatmul.mubr.f32.vlgmr.msra.gmra.mrb[0].mxu0 %v1084_v25  ;;  %635 = vmatpush3.bf16.msra.mxu1 %v632_v5 }
  0xc9   :  { %637 = vmatprep.subr.bf16.mxu1 %v636_v8 }
  0xcc   :  { %639 = vmatpush3.bf16.msra.mxu1 %v636_v8 }
 0x19b   :  { %v540_v29 = vpop.f32.mrb[0].mxu0 }
 0x19c   :  { %v239_v30 = vpop.f32.mrb[1].mxu0  ;;  %v245_v31 = vadd.f32 %v540_v29, %v464_v28 }
 0x19d   :  { %v240_v32 = vadd.f32 %v464_v28, %v239_v30 }
 0x19e   :  { %v249_v36 = vmax.f32 %v245_v31, 0.0 }
 0x19f   :  { %v248_v35 = vmax.f32 %v240_v32, 0.0 }
 0x1a0   :  { %v253_v38 = vmul.f32 %v1087_v34, %v249_v36 }
 0x1a1   :  { %v252_v37 = vmul.f32 %v1087_v34, %v248_v35 }
 0x1a3   :  { %254 = vadd.xlane.f32.xlu0 %v252_v37 }
 0x1a7   :  { %256 = vadd.xlane.f32.xlu0 %v253_v38 }
 0x230   :  { %v255_v45 = vpop.xlane.xlu0 %254 }
 0x231   :  { %v258_v46 = vmul.f32 0.03125, %v255_v45 }
 0x233   :  { %v260_v47 = vsub.f32 %v248_v35, %v258_v46 }
 0x234   :  { %v257_v48 = vpop.xlane.xlu0 %256 }
 0x235   :  { %v259_v49 = vmul.f32 0.03125, %v257_v48  ;;  %v262_v50 = vmul.f32 %v1087_v34, %v260_v47 }
 0x237   :  { %v261_v51 = vsub.f32 %v249_v36, %v259_v49  ;;  %v264_v52 = vmul.f32 %v262_v50, %v262_v50 }
 0x239   :  { %266 = vadd.xlane.f32.xlu1 %v264_v52  ;;  %v263_v53 = vmul.f32 %v1087_v34, %v261_v51 }
 0x23b   :  { %v265_v54 = vmul.f32 %v263_v53, %v263_v53 }
 0x23d   :  { %268 = vadd.xlane.f32.xlu1 %v265_v54  ;;  %v468_v54 = vld [vmem:[#allocation14] ss:$0 sm:$0xff] }
 0x2c6   :  { %v267_v10 = vpop.xlane.xlu1 %266 }
 0x2c7   :  { %v270_v11 = vmul.f32 0.03125, %v267_v10 }
 0x2c9   :  { %v272_v12 = vadd.f32 1e-05, %v270_v11 }
 0x2ca   :  { %v269_v13 = vpop.xlane.xlu1 %268 }
 0x2cb   :  { %653 = vrsqrt.f32 %v272_v12  ;;  %v271_v14 = vmul.f32 0.03125, %v269_v13 }
 0x2cd   :  { %v273_v15 = vadd.f32 1e-05, %v271_v14 }
 0x2cf   :  { %655 = vrsqrt.f32 %v273_v15 }
 0x2d5   :  { %v654_v16 = vpop.eup %653 }
 0x2d6   :  { %v276_v18 = vmul.f32 %v654_v16, %v262_v50 }
 0x2d8   :  { %v284_v20 = vmul.f32 %v465_v17, %v276_v18 }
 0x2d9   :  { %v656_v21 = vpop.eup %655 }
 0x2da   :  { %v277_v22 = vmul.f32 %v656_v21, %v263_v53  ;;  %v292_v23 = vadd.f32 %v466_v19, %v284_v20 }
 0x2dc   :  { %v285_v24 = vmul.f32 %v465_v17, %v277_v22  ;;  %573 = vmatprep.mubr.f32.mxu1 %v292_v23 }
 0x2de   :  { %v293_v26 = vadd.f32 %v466_v19, %v285_v24 }
 0x2e0   :  { %574 = vmatmul.mubr.f32.vlgmr.msra.gmra.mrb[0].mxu1 %v293_v26 }
 0x3b3   :  { %v575_v28 = vpop.f32.mrb[0].mxu1 }
 0x3b4   :  { %v389_v29 = vadd.f32 %v575_v28, %v467_v27  ;;  %v383_v30 = vpop.f32.mrb[1].mxu1 }
 0x3b5   :  { %v384_v31 = vadd.f32 %v467_v27, %v383_v30 }
 0x3b6   :  { %v393_v32 = vmax.f32 %v389_v29, 0.0 }
 0x3b7   :  { %v392_v33 = vmax.f32 %v384_v31, 0.0 }
 0x3b8   :  { %v397_v35 = vmul.f32 %v1087_v34, %v393_v32 }
 0x3b9   :  { %v396_v36 = vmul.f32 %v1087_v34, %v392_v33 }
 0x3ba   :  { %400 = vadd.xlane.f32.xlu1 %v397_v35 }
 0x3bb   :  { %398 = vadd.xlane.f32.xlu0 %v396_v36 }
 0x447   :  { %v401_v37 = vpop.xlane.xlu1 %400 }
 0x448   :  { %v403_v38 = vmul.f32 0.03125, %v401_v37  ;;  %v399_v39 = vpop.xlane.xlu0 %398 }
 0x449   :  { %v402_v40 = vmul.f32 0.03125, %v399_v39 }
 0x44a   :  { %v405_v41 = vsub.f32 %v393_v32, %v403_v38 }
 0x44b   :  { %v404_v42 = vsub.f32 %v392_v33, %v402_v40 }
 0x44c   :  { %v407_v43 = vmul.f32 %v1087_v34, %v405_v41 }
 0x44d   :  { %v406_v44 = vmul.f32 %v1087_v34, %v404_v42 }
 0x44e   :  { %v409_v45 = vmul.f32 %v407_v43, %v407_v43 }
 0x44f   :  { %v408_v46 = vmul.f32 %v406_v44, %v406_v44 }
 0x450   :  { %412 = vadd.xlane.f32.xlu1 %v409_v45 }
 0x451   :  { %410 = vadd.xlane.f32.xlu0 %v408_v46 }
 0x4dd   :  { %v413_v47 = vpop.xlane.xlu1 %412 }
 0x4de   :  { %v415_v48 = vmul.f32 0.03125, %v413_v47  ;;  %v411_v49 = vpop.xlane.xlu0 %410 }
 0x4df   :  { %v414_v50 = vmul.f32 0.03125, %v411_v49 }
 0x4e0   :  { %v417_v51 = vadd.f32 1e-05, %v415_v48 }
 0x4e1   :  { %v416_v52 = vadd.f32 1e-05, %v414_v50 }
 0x4e2   :  { %657 = vrsqrt.f32 %v417_v51 }
 0x4e3   :  { %659 = vrsqrt.f32 %v416_v52 }
 0x4ec   :  { %v658_v53 = vpop.eup %657 }
 0x4ed   :  { %v660_v55 = vpop.eup %659  ;;  %v421_v56 = vmul.f32 %v658_v53, %v407_v43 }
 0x4ee   :  { %v420_v58 = vmul.f32 %v660_v55, %v406_v44 }
 0x4ef   :  { %v429_v59 = vmul.f32 %v468_v54, %v421_v56 }
 0x4f0   :  { %v428_v34 = vmul.f32 %v468_v54, %v420_v58 }
 0x4f1   :  { %v437_v60 = vadd.f32 %v469_v57, %v429_v59 }
 0x4f2   :  { %v436_v61 = vadd.f32 %v469_v57, %v428_v34 }
 0x4f3   :  { %v439_v62 = vadd.f32 %v437_v60, %v1084_v25 }
 0x4f4   :  { %v438_v63 = vadd.f32 %v436_v61, %v1081_v9 }
 0x4f5   :  { %441 = vst [vmem:[#allocation17 + $0x8] sm:$0xff] %v439_v62 }
 0x4f6   :  { %440 = vst [vmem:[#allocation17] sm:$0xff] %v438_v63 }
 0x4f7   :  { %870 = shalt.err (!%p867_p6)
}
 0x4f8   :  { %s871_s1 = scalar_lea.hbm %s1123_s9, 256 }
 0x4f9   :  { %p872_p7 = scmp.ne.s32.totalorder %s1123_s9, %s871_s1  ;;  %p875_p8 = scmp.lt.u32.totalorder %s871_s1, %s1123_s9 }
 0x4fb   :  { %p877_p9 = pnand %p875_p8, %p872_p7 }
 0x4fd   :  { %880 = shalt.err (!%p877_p9)
}
 0x4fe   :  { %453 = dma.vmem_to_hbm [thread:$0]  %s448_s24, 256, %s1123_s9, [#allocation4], %s895_s21, %s895_s21, %s896_s22  }
 0x4ff   :  { %891 = dma.done.wait [#allocation4], 256  }
 0x500   :  { %892 = vsyncadd [#allocation4], 4294967040 }
 0x501   :  { %457 = vsyncpa [#allocation3], 1 }
 0x502   :  { %458 = vsyncpa [#allocation6], 1 }
 0x503   :  { %459 = vsyncpa [#allocation9], 1 }
 0x504   :  { %460 = vsyncpa [#allocation12], 1 }
 0x505   :  { %461 = vsyncpa [#allocation15], 1 }
 0x506   :  { %462 = vsyncpa [#allocation4], 1 }

</bundles_post_ra>
